<compile_context>
chip_gen: v6e
topology: v6e:2x2x1
jax: 0.10.0
libtpu: 0.0.40
codegen_flags: <defaults>
</compile_context>

<pallas_src>
import functools

import jax
import jax.numpy as jnp
from jax import lax
from jax.experimental import pallas as pl
from jax.experimental.pallas import tpu as pltpu


def _aligned_row_shape(row_elems: int):
    """(8,128)-aligned 2-D view of one table row, or None if not expressible."""
    if row_elems % (8 * 128) == 0:
        # Lane-dense: 8 sublanes, big multiple-of-128 lane dim -> unmasked vst.
        return 8, row_elems // 8
    return None


# ---------------------------------------------------------------------------
# Small-batch path: per-row gather through the index_map.  Reads only the B
# requested rows from HBM; no resident table pinned in VMEM.
# ---------------------------------------------------------------------------
def _gather_kernel(y_ref, a_ref, o_ref):
    del y_ref  # row selection already happened in the index_map
    o_ref[...] = a_ref[...]


def _gather_forward(table, y32, *, row_shape):
    b = y32.shape[0]
    r, c = row_shape
    itemsize = jnp.dtype(table.dtype).itemsize
    row_bytes = r * c * itemsize
    cost = pl.CostEstimate(
        flops=0,
        transcendentals=0,
        bytes_accessed=2 * b * row_bytes + b * 4,   # row read + row write + ids
    )
    grid_spec = pltpu.PrefetchScalarGridSpec(
        num_scalar_prefetch=1,
        grid=(b,),
        in_specs=[
            # Data-dependent row fetch: the scalar-prefetched class id picks
            # the table row block for this grid step.
            pl.BlockSpec((1, r, c), lambda i, y_ref: (y_ref[i], 0, 0)),
        ],
        out_specs=pl.BlockSpec((1, r, c), lambda i, y_ref: (i, 0, 0)),
    )
    return pl.pallas_call(
        _gather_kernel,
        grid_spec=grid_spec,
        out_shape=jax.ShapeDtypeStruct((b, r, c), table.dtype),
        compiler_params=pltpu.CompilerParams(
            dimension_semantics=("parallel",),
        ),
        cost_estimate=cost,
    )(y32, table)


# ---------------------------------------------------------------------------
# Large-batch path: full table VMEM-resident (DMA'd once), batch tiled.
# ---------------------------------------------------------------------------
def _resident_kernel(y_ref, a_ref, o_ref, *, batch_tile):
    # y_ref : (B_pad,) int32 in SMEM (scalar-prefetched class ids)
    # a_ref : (num_classes, r, c) full table, VMEM-resident
    # o_ref : (batch_tile, r, c) output tile for this grid step
    base = pl.program_id(0) * batch_tile

    def body(t, carry):
        yid = y_ref[base + t]      # scalar read from SMEM
        o_ref[t] = a_ref[yid]      # dynamic row gather from resident table
        return carry

    # Unrolled fori_loop: scheduler-visible, bounded live ranges as TB grows.
    lax.fori_loop(0, batch_tile, body, 0, unroll=True)


def _resident_forward(table, y32, *, row_shape, batch_tile, vmem_limit_bytes):
    num_classes = table.shape[0]
    b = y32.shape[0]
    r, c = row_shape
    itemsize = jnp.dtype(table.dtype).itemsize

    # Prefer a tile that divides B exactly (no padded-row writeback); only pad
    # when the best divisor would leave the tile badly undersized.
    tb = min(batch_tile, b)
    if b % tb != 0:
        best_div = max(d for d in range(1, tb + 1) if b % d == 0)
        if 2 * best_div >= tb:
            tb = best_div
    num_tiles = pl.cdiv(b, tb)
    b_pad = num_tiles * tb
    if b_pad != b:
        # Pad with class 0 (always valid); padded rows are sliced off below.
        y32 = jnp.concatenate([y32, jnp.zeros((b_pad - b,), jnp.int32)])

    table_bytes = num_classes * r * c * itemsize
    tile_bytes = tb * r * c * itemsize
    if vmem_limit_bytes is None:
        # Double-buffered table + double-buffered output tile + scratch slack.
        vmem_limit_bytes = 2 * table_bytes + 2 * tile_bytes + (8 << 20)
        vmem_limit_bytes = max(32 << 20, min(vmem_limit_bytes, 100 << 20))

    cost = pl.CostEstimate(
        flops=0,
        transcendentals=0,
        bytes_accessed=table_bytes                      # table read once
        + b_pad * r * c * itemsize                      # output writeback
        + b_pad * 4,                                    # indices
    )

    grid_spec = pltpu.PrefetchScalarGridSpec(
        num_scalar_prefetch=1,
        grid=(num_tiles,),
        in_specs=[
            # Full-table block with a constant index map: DMA'd once, then
            # VMEM-resident for every grid step (no per-row HBM re-reads).
            pl.BlockSpec((num_classes, r, c), lambda i, y_ref: (0, 0, 0)),
        ],
        out_specs=pl.BlockSpec((tb, r, c), lambda i, y_ref: (i, 0, 0)),
    )

    out = pl.pallas_call(
        functools.partial(_resident_kernel, batch_tile=tb),
        grid_spec=grid_spec,
        out_shape=jax.ShapeDtypeStruct((b_pad, r, c), table.dtype),
        compiler_params=pltpu.CompilerParams(
            dimension_semantics=("parallel",),   # independent output tiles
            vmem_limit_bytes=int(vmem_limit_bytes),
        ),
        cost_estimate=cost,
    )(y32, table)

    if b_pad != b:
        out = out[:b]
    return out


# ---------------------------------------------------------------------------
# Public wrapper == A_embedding.forward
# ---------------------------------------------------------------------------
def a_embedding_forward(table_3d: jax.Array, y: jax.Array, *,
                        batch_tile: int = 16,
                        small_batch_factor: int = 4,
                        vmem_limit_bytes: int | None = None) -> jax.Array:
    """Pallas implementation of A_embedding.forward.

    table_3d : (num_classes, n, No_feature) float32 embedding table
    y        : (B,) integer class ids in [0, num_classes)
    returns  : (B, n, No_feature) == embedding(y).view(-1, n, No_feature)

    On v7x prefer batch_tile=8 (64 MiB VMEM/TC); on v5e/v6e batch_tile=16-32.
    """
    num_classes, n, no_feature = table_3d.shape
    b = y.shape[0]

    # Clamp: VMEM dynamic indexing has no runtime OOB check, so an invalid
    # class id would silently read adjacent/stale VMEM.
    y32 = jnp.clip(y.astype(jnp.int32), 0, num_classes - 1)

    row_shape = _aligned_row_shape(n * no_feature)
    if row_shape is None:
        row_shape = (n, no_feature)
        table = table_3d
    else:
        table = table_3d.reshape(num_classes, *row_shape)  # free row-major view

    if b < small_batch_factor * num_classes:
        out = _gather_forward(table, y32, row_shape=row_shape)
    else:
        out = _resident_forward(table, y32, row_shape=row_shape,
                                batch_tile=batch_tile,
                                vmem_limit_bytes=vmem_limit_bytes)
    return out.reshape(b, n, no_feature)


def make_embedding_table(key, num_classes: int, n: int, no_feature: int) -> jax.Array:
    """Deterministic stand-in for Asvd.svd(): a (num_classes, n, No_feature) table.

    The real module builds this from per-class SVD right-singular vectors at
    __init__ time; the forward pass only does the lookup, so any deterministic
    table reproduces the forward semantics.
    """
    flat = jax.random.normal(key, (num_classes, n * no_feature), dtype=jnp.float32)
    return flat.reshape(num_classes, n, no_feature)


if __name__ == "__main__":
    NUM_CLASSES = 10   # fixed by the per-label SVD loop in Asvd.svd()
    key = jax.random.PRNGKey(0)

    def run_case(idx, n, no_feature, batch, batch_tile=16):
        k_table, k_y = jax.random.split(jax.random.fold_in(key, idx))
        table = make_embedding_table(k_table, NUM_CLASSES, n, no_feature)
        y = jax.random.randint(k_y, (batch,), 0, NUM_CLASSES, dtype=jnp.int32)
        out = a_embedding_forward(table, y, batch_tile=batch_tile)
        out = jax.block_until_ready(out)
        ref = jnp.take(table, y, axis=0)          # plain-JAX embedding lookup
        assert out.shape == (batch, n, no_feature)
        assert jnp.array_equal(out, ref)

    # 1) Small-batch index-map gather path, (8,128)-aligned rows (n*F = 1024).
    #    (module defaults are n=100, No_feature=3072; scaled down here)
    run_case(0, n=4, no_feature=256, batch=2)
    # 2) Large-batch VMEM-resident-table path; tb=16 divides B=48 (no padding).
    run_case(1, n=4, no_feature=256, batch=48, batch_tile=16)
    # 3) Fallback row layout (n*F not a multiple of 1024), gather path.
    run_case(2, n=3, no_feature=96, batch=5)

    print("KERNEL_OK")
</pallas_src>

<mosaic_0001>
module attributes {stable_mosaic.version = 11 : i64} {
  func.func @_gather_kernel(%arg0: i32, %arg1: memref<2xi32, #tpu.memory_space<smem>>, %arg2: memref<1x8x128xf32, #tpu.memory_space<vmem>>, %arg3: memref<1x8x128xf32, #tpu.memory_space<vmem>>) attributes {dimension_semantics = [#tpu.dimension_semantics<parallel>], iteration_bounds = array<i64: 2>, scalar_prefetch = 1 : i64, scratch_operands = 0 : i64, tpu.core_type = #tpu.core_type<tc>, window_params = [{transform_indices = @transform_0, window_bounds = array<i64: 1, 8, 128>}, {transform_indices = @transform_1, window_bounds = array<i64: 1, 8, 128>}]} {
    %c0 = arith.constant 0 : index
    %c0_0 = arith.constant 0 : index
    %c0_1 = arith.constant 0 : index
    %0 = vector.load %arg2[%c0, %c0_0, %c0_1] : memref<1x8x128xf32, #tpu.memory_space<vmem>>, vector<1x8x128xf32>
    %c0_2 = arith.constant 0 : index
    %c0_3 = arith.constant 0 : index
    %c0_4 = arith.constant 0 : index
    %1 = vector.load %arg3[%c0_2, %c0_3, %c0_4] : memref<1x8x128xf32, #tpu.memory_space<vmem>>, vector<1x8x128xf32>
    tpu.vector_store %arg3[%c0_2, %c0_3, %c0_4], %0 {strides = array<i32>} : memref<1x8x128xf32, #tpu.memory_space<vmem>>, vector<1x8x128xf32>,
    return
  }
  func.func @transform_0(%arg0: i32, %arg1: memref<2xi32, #tpu.memory_space<smem>>) -> (i32, i32, i32) {
    %0 = arith.index_cast %arg0 : i32 to index
    %1 = memref.load %arg1[%0] : memref<2xi32, #tpu.memory_space<smem>>
    %c0_i32 = arith.constant 0 : i32
    %c0_i32_0 = arith.constant 0 : i32
    %c0_i32_1 = arith.constant 0 : i32
    return %1, %c0_i32, %c0_i32_0 : i32, i32, i32
  }
  func.func @transform_1(%arg0: i32, %arg1: memref<2xi32, #tpu.memory_space<smem>>) -> (i32, i32, i32) {
    %c0_i32 = arith.constant 0 : i32
    %c0_i32_0 = arith.constant 0 : i32
    %c0_i32_1 = arith.constant 0 : i32
    return %arg0, %c0_i32, %c0_i32_0 : i32, i32, i32
  }
}

</mosaic_0001>

<bundles_post_ra>
// kernel: tpu_custom_call.1
= control target key start
LH: loop header
LB: loop body
LE: loop exit
PB: predicated region body
PF: predicated region fallthrough
CT: control target
= control target key end

     0   :  { %s442_s9 = smov [#allocation3]   ;;  %s637_s0 = inlined_call_operand.hbm [shape: s32[2], index: 0, kind: input, shape index: {}]   ;;  %s638_s1 = inlined_call_operand.hbm [shape: f32[10,8,128], index: 1, kind: input, shape index: {}]   ;;  %s639_s2 = inlined_call_operand.hbm [shape: f32[2,8,128], index: 2, kind: output, shape index: {}]  }
   0x1   :  { %8 = dma.hbm_to_smem %s637_s0, 16, %s442_s9, [#allocation2] }
   0x2   :  { %404 = dma.done.wait [#allocation2], 16 }
   0x3   :  { %405 = vsyncadd [#allocation2], 4294967280 }
   0x4   :  { %10 = sfence }
   0x5   :  { %11 = vsyncpa [#allocation5], 0 }
   0x6   :  { %13 = vsyncpa [#allocation5 + $0x1], 0 }
   0x7   :  { %14 = vsyncpa [#allocation6], 0 }
   0x8   :  { %16 = vsyncpa [#allocation6 + $0x1], 0  ;;  %s463_s12 = smov 0   ;;  %s465_s13 = smov 0  }
   0x9   :  { %s467_s14 = smov 0   ;;  %s469_s15 = smov 0  }
   0xa   :  { %s471_s16 = smov 0   ;;  %s473_s17 = smov 0  }
   0xb   :  { %s475_s0 = smov 0  }
   0xc LB: > { %s497_s18 = sadd.s32 4294967295, %s440_s0   ;;  %s227_s19 = sadd.s32 4294967294, %s440_s0   ;;  %s440_s0 = sphi %s475_s0, %s659_s0   ;;  %s436_s17 = sphi %s473_s17, %s658_s17   ;;  %s432_s16 = sphi %s471_s16, %s657_s16   ;;  %s428_s15 = sphi %s469_s15, %s656_s15   ;;  %s424_s14 = sphi %s467_s14, %s655_s14   ;;  %s420_s13 = sphi %s465_s13, %s654_s13   ;;  %s416_s12 = sphi %s463_s12, %s653_s12  }
   0xd   : > { %s501_s20 = sadd.s32 1, %s440_s0   ;;  %s26_s21 = sld [smem:[#allocation3 + %s440_s0]] }
   0xe   : > { %s27_s22 = sld [smem:[#allocation3 + %s501_s20]]  ;;  %s31_s23 = sadd.s32 1, %s436_s17 }
   0xf   : > { %p38_p0 = scmp.ne.s32.totalorder %s436_s17, %s432_s16  ;;  %p39_p1 = scmp.eq.s32.totalorder %s440_s0, 0 }
  0x10   : > { %p44_p2 = scmp.ne.s32.totalorder %s432_s16, %s428_s15  ;;  %p45_p3 = scmp.eq.s32.totalorder %s497_s18, 0 }
  0x11   : > { %p511_p4 = por %p39_p1, %p38_p0  ;;  %s54_s25 = ssub.s32 %s440_s0, %s501_s20 }
  0x12   : > { %p517_p5 = por %p45_p3, %p44_p2  ;;  %p55_p6 = scmp.eq.s32.totalorder %s54_s25, 0 }
  0x13   : > { %s57_s27 = sadd.s32 1, %s424_s14  ;;  %p67_p7 = scmp.ne.s32.totalorder %s424_s14, %s420_s13 }
  0x14   : > { %s643_s26 = scalar_select %p517_p5, 1, 0 }
  0x15   : > { %s28_s28 = ssub.s32 %s26_s21, %s27_s22  ;;  %p68_p8 = scmp.eq.s32.totalorder %s497_s18, 1 }
  0x16   : > { %p29_p9 = scmp.eq.s32.totalorder %s28_s28, 0  ;;  %p73_p10 = scmp.ne.s32.totalorder %s420_s13, %s416_s12 }
  0x17   : > { %s528_s29 = scalar_select %p55_p6, %s424_s14, %s57_s27  }
  0x18   : > { %s531_s30 = scalar_select %p29_p9, %s436_s17, %s31_s23  }
  0x19   : > { %p533_p11 = por %p68_p8, %p67_p7  ;;  %p74_p12 = scmp.eq.s32.totalorder %s227_s19, 1 }
  0x1a   : > { %p255_p0 = scmp.lt.s32.totalorder %s440_s0, 2  ;;  %s94_s5 = sand.u32 1, %s436_s17  }
  0x1b   : > { %s644_s3 = scalar_select %p533_p11, 1, 0 }
  0x1c   : > { %p539_p1 = por %p74_p12, %p73_p10  ;;  %s230_s6 = sshll.u32 %s94_s5, 3 }
  0x1d   : > { %p546_p2 = pnand %p255_p0, %p511_p4  ;;  %p232_p3 = scmp.ge.s32.totalorder %s440_s0, 1 }
  0x1e   : > { %s645_s4 = scalar_select %p539_p1, 1, 0 }
  0x1f   : > { %s239_s8 = scalar_select %p511_p4, [#allocation3], [#allocation8] }
  0x20   : > { %s240_s9 = scalar_select %p511_p4, %s440_s0, 0 }
  0x21   : > { %s661_s8 = smov (!%p255_p0, %s239_s8), [#allocation9]  ;;  %p111_p6 = scmp.lt.s32.totalorder %s440_s0, 3 }
  0x22   : > { %s663_s9 = smov (!%p255_p0, %s240_s9), 0  ;;  %s98_s11 = scalar_lea.vmem [#allocation4], %s230_s6 }
  0x23   : > { %s99_s10 = sld [smem:[%s661_s8 + %s663_s9]]  ;;  %s106_s15 = sshll.u32 %s98_s11, 4  ;;  %s561_s15 = int_to_ptr.vmem [resolvable:$true] %s106_s15 }
  0x24   : > { %p557_p7 = pnand %p232_p3, %p111_p6  ;;  %s95_s25 = scalar_lea.sflag [#allocation5], %s94_s5 }
  0x25   : > { %p324_p8 = pneg %p546_p2  ;;  %s327_s8 = scalar_lea.hbm %s638_s1, 1280 }
  0x26   : > { %s647_s19 = scalar_select %p557_p7, 1, 0 }
  0x29   : > { %s231_s21 = sshll.u32 %s99_s10, 7 }
  0x2a   : > { %s104_s24 = scalar_lea.hbm %s638_s1, %s231_s21 }
  0x2b   : > { %s322_s27 = scalar_lea.hbm %s104_s24, 128  ;;  %p328_p12 = scmp.lt.s32.totalorder %s104_s24, %s638_s1 }
  0x2c   : > { %p323_p4 = scmp.ne.s32.totalorder %s104_s24, %s322_s27  ;;  %p329_p0 = scmp.lt.s32.totalorder %s327_s8, %s322_s27 }
  0x2e   : > { %p325_p9 = pnand %p324_p8, %p323_p4  ;;  %p330_p3 = por %p329_p0, %p328_p12 }
  0x30   : > { %p326_p10 = pneg %p325_p9 }
  0x32   : > { %p331_p6 = pnand %p330_p3, %p326_p10 }
  0x34   : > { %334 = shalt.err (!%p331_p6)
}
  0x35   : > { %s335_s5 = scalar_lea.vmem %s561_s15, 128  ;;  %s443_s10 = smov [#allocation4]  }
  0x36   : > { %p336_p13 = scmp.ne.s32.totalorder %s561_s15, %s335_s5  ;;  %s340_s21 = sshll.u32 %s443_s10, 4  ;;  %s341_s21 = int_to_ptr.vmem [resolvable:$false] %s340_s21 }
  0x37   : > { %s342_s22 = scalar_lea.vmem %s341_s21, 256  ;;  %p343_p9 = scmp.lt.s32.totalorder %s561_s15, %s341_s21 }
  0x38   : > { %p338_p1 = pnand %p336_p13, %p324_p8  ;;  %p344_p11 = scmp.lt.s32.totalorder %s342_s22, %s335_s5 }
  0x3a   : > { %p339_p4 = pneg %p338_p1  ;;  %p345_p5 = por %p344_p11, %p343_p9 }
  0x3c   : > { %p346_p7 = pnand %p345_p5, %p339_p4 }
  0x3e   : > { %349 = shalt.err (!%p346_p7)
}
  0x3f   : > { %250 = dma.hbm_to_vmem [thread:$0]  (!%p546_p2), %s104_s24, 128, %s561_s15, %s95_s25  }
  0x40   : > { %p648_p10 = scmp.ne.s32.totalorder %s647_s19, 0 }
  0x41   : > { %s117_s23 = sand.u32 (!%p648_p10), 1, %s432_s16   ;;  %p649_p13 = scmp.ne.s32.totalorder (!%p648_p10), %s643_s26, 0 }
  0x42   : > { %115 = sbr.rel (%p648_p10) target bundleno = 97 (0x61), region = 24  ;;  %s233_s27 = sshll.u32 (!%p648_p10), %s117_s23, 3 }
  0x43   : > { %s118_s28 = scalar_lea.sflag (!%p648_p10), [#allocation5], %s117_s23  ;;  %s121_s6 = scalar_lea.vmem (!%p648_p10), [#allocation4], %s233_s27 }
  0x47   : > { %407 = dma.done.wait (%p649_p13), %s118_s28, 128  }
  0x48   : > { %409 = vsyncadd (%p649_p13), %s118_s28, 4294967168  ;;  %s137_s7 = sand.u32 1, %s420_s13   ;;  %s236_s19 = sshll.u32 %s497_s18, 7  ;;  %v141_v0 = vld [vmem:[%s121_s6] sm:$0xff] }
  0x49   : > { %s234_s8 = sshll.u32 %s137_s7, 3  ;;  %s155_s11 = scalar_lea.hbm %s639_s2, %s236_s19 }
  0x4a   : > { %s139_s15 = scalar_lea.vmem [#allocation7], %s234_s8  ;;  %s144_s26 = scalar_lea.sflag [#allocation6], %s137_s7 }
  0x4b   : > { %s157_s24 = sshll.u32 %s139_s15, 4  ;;  %142 = vst [vmem:[%s139_s15] sm:$0xff] %v141_v0  ;;  %p650_p11 = scmp.ne.s32.totalorder %s644_s3, 0  ;;  %s589_s24 = int_to_ptr.vmem [resolvable:$true] %s157_s24 }
  0x4c   : > { %s350_s5 = scalar_lea.vmem %s589_s24, 128  ;;  %s444_s10 = smov [#allocation7]  }
  0x4d   : > { %p351_p5 = scmp.ne.s32.totalorder %s589_s24, %s350_s5  ;;  %s354_s21 = sshll.u32 %s444_s10, 4  ;;  %s355_s21 = int_to_ptr.vmem [resolvable:$false] %s354_s21 }
  0x4e   : > { %s356_s18 = scalar_lea.vmem %s355_s21, 256  ;;  %p357_p7 = scmp.lt.s32.totalorder %s589_s24, %s355_s21 }
  0x4f   : > { %p352_p1 = pnand %p351_p5, %p650_p11  ;;  %p358_p8 = scmp.lt.s32.totalorder %s356_s18, %s350_s5 }
  0x51   : > { %p353_p2 = pneg %p352_p1  ;;  %p359_p12 = por %p358_p8, %p357_p7 }
  0x53   : > { %p360_p0 = pnand %p359_p12, %p353_p2 }
  0x55   : > { %363 = shalt.err (!%p360_p0)
}
  0x56   : > { %s364_s22 = scalar_lea.hbm %s155_s11, 128  ;;  %s368_s28 = scalar_lea.hbm %s639_s2, 256 }
  0x57   : > { %p365_p3 = scmp.ne.s32.totalorder %s155_s11, %s364_s22  ;;  %p369_p9 = scmp.lt.s32.totalorder %s155_s11, %s639_s2 }
  0x58   : > { %p370_p10 = scmp.lt.s32.totalorder %s368_s28, %s364_s22 }
  0x59   : > { %p366_p6 = pnand %p365_p3, %p650_p11 }
  0x5a   : > { %p371_p13 = por %p370_p10, %p369_p9 }
  0x5b   : > { %p367_p4 = pneg %p366_p6 }
  0x5d   : > { %p372_p5 = pnand %p371_p13, %p367_p4 }
  0x5f   : > { %375 = shalt.err (!%p372_p5)
}
  0x60   : > { %243 = dma.vmem_to_hbm [thread:$0]  (%p650_p11), %s589_s24, 128, %s155_s11, %s144_s26  }
  0x61 PF: > { %s169_s8 = sand.u32 1, %s416_s12   ;;  %p651_p1 = scmp.ne.s32.totalorder %s645_s4, 0 }
  0x62   : > { %p652_p2 = scmp.ge.s32.totalorder %s440_s0, 2  ;;  %s170_s15 = scalar_lea.sflag [#allocation6], %s169_s8 }
  0x64   : > { %p252_p7 = pnand %p652_p2, %p651_p1 }
  0x66   : > { %p253_p8 = pneg %p252_p7 }
  0x68   : > { %411 = dma.done.wait (%p253_p8), %s170_s15, 128  }
  0x69   : > { %413 = vsyncadd (%p253_p8), %s170_s15, 4294967168  ;;  %p19_p11 = scmp.ge.s32.totalorder %s501_s20, 4   ;;  %s653_s12 = smov %s420_s13 }
  0x6a   : > { %s654_s13 = smov %s424_s14  ;;  %s655_s14 = smov %s528_s29 }
  0x6b   : > { %s656_s15 = smov %s432_s16  ;;  %s657_s16 = smov %s436_s17 }
  0x6c   : > { %s658_s17 = smov %s531_s30  ;;  %s659_s0 = smov %s501_s20 }
  0x6d   :  { %21 = sbr.rel (!%p19_p11) target bundleno = 12 (0xc), region = 69 }
  0x72   :  { %175 = vsyncpa [#allocation5], 1 }
  0x73   :  { %177 = vsyncpa [#allocation5 + $0x1], 1 }
  0x74   :  { %178 = vsyncpa [#allocation6], 1 }
  0x75   :  { %180 = vsyncpa [#allocation6 + $0x1], 1 }

</bundles_post_ra>
